<compile_context>
chip_gen: v7x
topology: tpu7x:2x2x1
jax: 0.10.0
libtpu: 0.0.40
codegen_flags: <defaults>
</compile_context>

<pallas_src>
import numpy as np
import jax
import jax.numpy as jnp
from jax.experimental import pallas as pl
from jax.experimental.pallas import tpu as pltpu


_LANE = 128


def _round_up(x, m):
    return ((x + m - 1) // m) * m


def _vmem_budget():
    """Generation-aware (working-set budget, scoped-vmem-limit cap) in bytes."""
    try:
        cap = pltpu.get_tpu_info().vmem_capacity_bytes
    except Exception:
        cap = 64 * 1024 * 1024                      # conservative (v7x-like) fallback
    if cap <= 64 * 1024 * 1024:                     # v7x: 64 MiB per TensorCore
        return 28 * 1024 * 1024, 44 * 1024 * 1024
    return 64 * 1024 * 1024, 96 * 1024 * 1024       # v5e / v6e: 128 MiB


# ----------------------------- Pallas kernel --------------------------------
def _stft_matmul_kernel(frames_ref, basis_ref, out_ref):
    # frames_ref: (tm, K), basis_ref: (K, tn or N), out_ref: (tm, tn or N)
    out_ref[...] = jnp.dot(
        frames_ref[...], basis_ref[...], preferred_element_type=jnp.float32
    )


def _stft_matmul(frames, basis):
    """frames @ basis on the MXU. frames: (M, K); basis: (K, N), N % 128 == 0."""
    M, K = frames.shape
    Kb, N = basis.shape
    assert K == Kb and N % _LANE == 0
    in_bytes = jnp.dtype(frames.dtype).itemsize
    budget, limit_cap = _vmem_budget()

    # ---- M tile -------------------------------------------------------------
    if M <= 256:
        tm = M                       # block equals full dim (exact, no mask)
    elif M >= 512 and budget >= 48 * 1024 * 1024:
        tm = 512                     # v5e/v6e: fewer, larger grid steps
    else:
        tm = 256

    # ---- Prefer keeping the whole windowed-DFT basis resident in VMEM -------
    def resident_footprint(tm_):
        # frames/out double-buffered; basis is fetched once (constant index_map)
        # but conservatively counted at default buffering.
        # TODO(synk): pipeline_mode=pl.Buffered(1) on the basis would halve its VMEM share.
        return 2 * (tm_ * K * in_bytes + K * N * in_bytes + tm_ * N * 4)

    resident = resident_footprint(tm) <= budget
    if not resident and tm > 128:
        for tm_try in (256, 128):
            if tm_try < tm and resident_footprint(tm_try) <= budget:
                tm, resident = tm_try, True
                break

    if resident:
        grid = (pl.cdiv(M, tm),)
        in_specs = [
            pl.BlockSpec((tm, K), lambda i: (i, 0)),   # frame tile
            pl.BlockSpec((K, N), lambda i: (0, 0)),    # resident basis (DMA'd once)
        ]
        out_specs = pl.BlockSpec((tm, N), lambda i: (i, 0))
        dim_sem = ("parallel",)
        footprint = resident_footprint(tm)
        bytes_accessed = (M * K + K * N) * in_bytes + M * N * 4
    else:
        # Tiled fallback for very large n_fft: basis-major (N outer) so the basis
        # slab only changes n_tiles times while frames stream through the M loop.
        def tiled_footprint(tm_, tn_):
            return 2 * (tm_ * K * in_bytes + K * tn_ * in_bytes + tm_ * tn_ * 4)

        tn = N
        while tn > _LANE and tiled_footprint(tm, tn) > budget:
            tn -= _LANE
        while tm >= 256 and tiled_footprint(tm, tn) > budget:
            tm //= 2
        # TODO(synk): for n_fft >= ~4096 on v7x add a K-tiling grid axis ("arbitrary")
        # with an f32 VMEM accumulator instead of relying on tiny tm/tn tiles.
        m_tiles, n_tiles = pl.cdiv(M, tm), pl.cdiv(N, tn)
        grid = (n_tiles, m_tiles)
        in_specs = [
            pl.BlockSpec((tm, K), lambda j, i: (i, 0)),
            pl.BlockSpec((K, tn), lambda j, i: (0, j)),
        ]
        out_specs = pl.BlockSpec((tm, tn), lambda j, i: (i, j))
        dim_sem = ("parallel", "parallel")
        footprint = tiled_footprint(tm, tn)
        bytes_accessed = (n_tiles * M * K + K * N) * in_bytes + M * N * 4

    vmem_limit = None
    if footprint > 12 * 1024 * 1024:
        vmem_limit = min(
            _round_up(footprint + footprint // 4 + (2 << 20), 1 << 20), limit_cap
        )

    cost = pl.CostEstimate(
        flops=2 * M * K * N, transcendentals=0, bytes_accessed=bytes_accessed
    )

    return pl.pallas_call(
        _stft_matmul_kernel,
        out_shape=jax.ShapeDtypeStruct((M, N), jnp.float32),
        grid_spec=pltpu.PrefetchScalarGridSpec(
            num_scalar_prefetch=0,
            grid=grid,
            in_specs=in_specs,
            out_specs=out_specs,
        ),
        compiler_params=pltpu.CompilerParams(
            dimension_semantics=dim_sem,
            vmem_limit_bytes=vmem_limit,
        ),
        cost_estimate=cost,
    )(frames, basis)


# ------------------------------- STFT module ---------------------------------
class STFT:
    """JAX/Pallas re-implementation of the PyTorch STFT module forward pass.

    compute_dtype defaults to bfloat16 (MXU-native) with f32 accumulation; pass
    compute_dtype=jnp.float32 for tighter (~1e-4) spectra at lower MXU throughput.
    """

    def __init__(self, fft_length, hop_length=None, win_length=None, window=None,
                 center=True, pad_mode="reflect", normalized=False, onesided=True,
                 compute_dtype=jnp.bfloat16):
        self.fft_length = fft_length
        self.hop_length = hop_length if hop_length is not None else fft_length // 4
        self.win_length = win_length if win_length is not None else fft_length
        self.center = center
        self.pad_mode = pad_mode
        self.normalized = normalized
        self.onesided = onesided
        self.compute_dtype = compute_dtype

        n_fft = self.fft_length

        # Window (torch.hann_window default: periodic=True), built in float64 on host.
        if window is None:
            wl = self.win_length
            w = 0.5 - 0.5 * np.cos(2.0 * np.pi * np.arange(wl, dtype=np.float64) / wl)
        else:
            w = np.asarray(window, dtype=np.float64)
        wl = w.shape[0]
        self.window = jnp.asarray(w, dtype=jnp.float32)

        # Center-pad window to n_fft (torch.stft behavior for win_length < n_fft).
        left = (n_fft - wl) // 2
        win_full = np.zeros((n_fft,), np.float64)
        win_full[left:left + wl] = w

        num_freqs = n_fft // 2 + 1 if self.onesided else n_fft
        n_cols = _round_up(2 * num_freqs, _LANE)   # single lane-dense pad of the re/im pairs

        n = np.arange(n_fft, dtype=np.float64)[:, None]        # (n_fft, 1)
        k = np.arange(num_freqs, dtype=np.float64)[None, :]    # (1, num_freqs)
        angle = 2.0 * np.pi * n * k / n_fft
        basis = np.zeros((n_fft, n_cols), np.float64)
        basis[:, 0:2 * num_freqs:2] = win_full[:, None] * np.cos(angle)    # real
        basis[:, 1:2 * num_freqs:2] = -win_full[:, None] * np.sin(angle)   # imag
        if self.normalized:
            basis = basis / np.sqrt(float(n_fft))              # matches torch: * n_fft**-0.5

        self.basis = jnp.asarray(basis, dtype=compute_dtype)   # (n_fft, n_cols)
        self.num_freqs = num_freqs
        self.n_cols = n_cols

    def __call__(self, waveforms):
        """waveforms: (*, channel, time) -> (*, channel, num_freqs, num_frames, 2)"""
        waveforms = jnp.asarray(waveforms, jnp.float32)
        leading = waveforms.shape[:-1]
        time = waveforms.shape[-1]
        x = waveforms.reshape(-1, time)                        # (R, time)

        n_fft, hop = self.fft_length, self.hop_length
        if self.center:
            pad = n_fft // 2
            x = jnp.pad(x, ((0, 0), (pad, pad)), mode=self.pad_mode)

        padded_len = x.shape[-1]
        num_frames = 1 + (padded_len - n_fft) // hop

        # TODO(synk): fuse framing into the kernel (memory_space=pl.ANY + manual DMA of a
        # contiguous (tm-1)*hop + n_fft chunk per M tile) to avoid the ~(n_fft/hop)x-expanded
        # frames materialization in HBM.
        idx = jnp.arange(num_frames)[:, None] * hop + jnp.arange(n_fft)[None, :]
        frames = x[:, idx]                                     # (R, F, n_fft)
        R = frames.shape[0]
        frames_2d = frames.reshape(R * num_frames, n_fft).astype(self.compute_dtype)

        # Hot path: Pallas GEMM with the windowed, interleaved DFT basis.
        out = _stft_matmul(frames_2d, self.basis)              # (R*F, n_cols) f32

        out = out.reshape(R, num_frames, self.n_cols)[..., : 2 * self.num_freqs]
        out = out.reshape(R, num_frames, self.num_freqs, 2)    # re/im interleaved -> last dim
        out = jnp.transpose(out, (0, 2, 1, 3))                 # (R, num_freqs, F, 2)
        return out.reshape(leading + (self.num_freqs, num_frames, 2))


if __name__ == "__main__":
    key = jax.random.PRNGKey(0)
    batch, channel, time = 2, 4, 32
    fft_length, hop_length = 16, 4

    waveforms = jax.random.normal(key, (batch, channel, time), dtype=jnp.float32)

    num_freqs = fft_length // 2 + 1
    num_frames = 1 + time // hop_length  # centered framing

    # Numerical reference: framed, hann-windowed rFFT (same math as torch.stft defaults).
    x_ref = np.asarray(waveforms, np.float64).reshape(-1, time)
    pad = fft_length // 2
    x_ref = np.pad(x_ref, ((0, 0), (pad, pad)), mode="reflect")
    w_ref = 0.5 - 0.5 * np.cos(2.0 * np.pi * np.arange(fft_length) / fft_length)
    ref = np.empty((x_ref.shape[0], num_freqs, num_frames, 2), np.float64)
    for f in range(num_frames):
        seg = x_ref[:, f * hop_length:f * hop_length + fft_length] * w_ref
        spec = np.fft.rfft(seg, axis=-1)
        ref[:, :, f, 0] = spec.real
        ref[:, :, f, 1] = spec.imag
    ref = ref.reshape(batch, channel, num_freqs, num_frames, 2)

    # f32 compute path: tight tolerance.
    module_f32 = STFT(fft_length, hop_length=hop_length, compute_dtype=jnp.float32)
    res_f32 = jax.block_until_ready(module_f32(waveforms))
    assert res_f32.shape == (batch, channel, num_freqs, num_frames, 2), res_f32.shape
    np.testing.assert_allclose(np.asarray(res_f32, np.float64), ref, rtol=1e-4, atol=1e-4)

    # Default bf16 compute path (MXU-native, f32 accumulation): relaxed tolerance.
    module_bf16 = STFT(fft_length, hop_length=hop_length)
    res_bf16 = jax.block_until_ready(module_bf16(waveforms))
    assert res_bf16.shape == (batch, channel, num_freqs, num_frames, 2), res_bf16.shape
    np.testing.assert_allclose(np.asarray(res_bf16, np.float64), ref, rtol=5e-2, atol=2e-1)

    print("KERNEL_OK")
</pallas_src>

<mosaic_0001>
module attributes {stable_mosaic.version = 11 : i64} {
  func.func @_stft_matmul_kernel(%arg0: i32, %arg1: memref<72x16xf32, #tpu.memory_space<vmem>>, %arg2: memref<16x128xf32, #tpu.memory_space<vmem>>, %arg3: memref<72x128xf32, #tpu.memory_space<vmem>>) attributes {dimension_semantics = [#tpu.dimension_semantics<parallel>], iteration_bounds = array<i64: 1>, scalar_prefetch = 0 : i64, scratch_operands = 0 : i64, tpu.core_type = #tpu.core_type<tc>, window_params = [{transform_indices = @transform_0, window_bounds = array<i64: 72, 16>}, {pipeline_mode = #tpu.pipeline_mode<synchronous>, transform_indices = @transform_1, window_bounds = array<i64: 16, 128>}, {transform_indices = @transform_2, window_bounds = array<i64: 72, 128>}]} {
    %c0 = arith.constant 0 : index
    %c0_0 = arith.constant 0 : index
    %0 = vector.load %arg1[%c0, %c0_0] : memref<72x16xf32, #tpu.memory_space<vmem>>, vector<72x16xf32>
    %c0_1 = arith.constant 0 : index
    %c0_2 = arith.constant 0 : index
    %1 = vector.load %arg2[%c0_1, %c0_2] : memref<16x128xf32, #tpu.memory_space<vmem>>, vector<16x128xf32>
    %cst = arith.constant dense<0.000000e+00> : vector<72x128xf32>
    %2 = tpu.matmul %0, %1, %cst {dimension_numbers = #tpu.dot_dimension_numbers<[1], [0], [0], [1], [0, 0, 1, 1], [], []>} : vector<72x16xf32>, vector<16x128xf32>, vector<72x128xf32> -> vector<72x128xf32>
    %c0_3 = arith.constant 0 : index
    %c0_4 = arith.constant 0 : index
    %3 = vector.load %arg3[%c0_3, %c0_4] : memref<72x128xf32, #tpu.memory_space<vmem>>, vector<72x128xf32>
    tpu.vector_store %arg3[%c0_3, %c0_4], %2 {strides = array<i32>} : memref<72x128xf32, #tpu.memory_space<vmem>>, vector<72x128xf32>,
    return
  }
  func.func @transform_0(%arg0: i32) -> (i32, i32) {
    %c0_i32 = arith.constant 0 : i32
    %c0_i32_0 = arith.constant 0 : i32
    return %arg0, %c0_i32 : i32, i32
  }
  func.func @transform_1(%arg0: i32) -> (i32, i32) {
    %c0_i32 = arith.constant 0 : i32
    %c0_i32_0 = arith.constant 0 : i32
    %c0_i32_1 = arith.constant 0 : i32
    return %c0_i32, %c0_i32_0 : i32, i32
  }
  func.func @transform_2(%arg0: i32) -> (i32, i32) {
    %c0_i32 = arith.constant 0 : i32
    %c0_i32_0 = arith.constant 0 : i32
    return %arg0, %c0_i32 : i32, i32
  }
}

</mosaic_0001>

<bundles_post_ra>
// kernel: tpu_custom_call.1
= control target key start
LH: loop header
LB: loop body
LE: loop exit
PB: predicated region body
PF: predicated region fallthrough
CT: control target
= control target key end

     0   :  { %v272_v2 = vmov 0.0|0.0   ;;  %vm273_vm0 = vmmov 0   ;;  %v274_v4 = vmov 0.0   ;;  %vm23_vm1 = vcmask 130048   ;;  %s356_s0 = inlined_call_operand.vmem [shape: f32[72,16], index: 0, kind: input, shape index: {}]   ;;  %s357_s1 = inlined_call_operand.vmem [shape: f32[16,128], index: 1, kind: input, shape index: {}]   ;;  %s358_s2 = inlined_call_operand.hbm [shape: f32[72,128], index: 2, kind: output, shape index: {}]  }
   0x1   :  { %v21_v0 = vld [vmem:[%s357_s1] sm:$0xff]  ;;  %v22_v1 = vld [vmem:[%s357_s1 + $0x8] sm:$0xff]  ;;  %237 = vmatprep.subr.bf16.mxu0 %v272_v2  ;;  %240 = vmatprep.subr.bf16.mxu1 %v272_v2 }
   0x2   :  { %v238_v3 = vpack.c.bf16 %v22_v1, %v21_v0  ;;  %210 = vmatprep.mubr.msk.f32.mxu0 %vm273_vm0, %v274_v4  ;;  %225 = vmatprep.mubr.msk.f32.mxu1 %vm273_vm0, %v274_v4  ;;  %v12_v5 = vld [vmem:[%s356_s0] sm:$0xff]  ;;  %v17_v6 = vld [vmem:[%s356_s0 + $0x28] sm:$0xff] }
   0x4   :  { %239 = vmatpush3.bf16.msra.mxu0 %v238_v3  ;;  %241 = vmatpush3.bf16.msra.mxu1 %v238_v3 }
   0x5   :  { %7 = vsyncpa [#allocation3], 0  ;;  %v13_v7 = vld [vmem:[%s356_s0 + $0x8] sm:$0xff]  ;;  %v18_v8 = vld [vmem:[%s356_s0 + $0x30] sm:$0xff] }
   0x6   :  { %v14_v9 = vld [vmem:[%s356_s0 + $0x10] sm:$0xff]  ;;  %v19_v10 = vld [vmem:[%s356_s0 + $0x38] sm:$0xff]  ;;  %v20_v12 = vld [vmem:[%s356_s0 + $0x40] sm:$0xff] }
   0x7   :  { %211 = vmatmul.mubr.msk.f32.vlgmr.msra.gmra.mrb[0].mxu0 %vm23_vm1, %v12_v5  ;;  %226 = vmatmul.mubr.msk.f32.vlgmr.msra.gmra.mrb[0].mxu1 %vm23_vm1, %v17_v6  ;;  %v15_v11 = vld [vmem:[%s356_s0 + $0x18] sm:$0xff]  ;;  %v16_v13 = vld [vmem:[%s356_s0 + $0x20] sm:$0xff]  ;;  %s275_s0 = smov [#allocation2]  }
   0x8   :  { %213 = vmatprep.mubr.msk.f32.mxu0 %vm273_vm0, %v274_v4  ;;  %228 = vmatprep.mubr.msk.f32.mxu1 %vm273_vm0, %v274_v4  ;;  %s175_s30 = sshll.u32 %s275_s0, 4  ;;  %s176_s30 = int_to_ptr.vmem [resolvable:$true] %s175_s30 }
   0x9   :  { %s248_s3 = scalar_lea.vmem %s176_s30, 1152  ;;  %p253_p1 = scmp.lt.s32.totalorder %s176_s30, %s176_s30 }
   0xa   :  { %p249_p0 = scmp.ne.s32.totalorder %s176_s30, %s248_s3  ;;  %p254_p2 = scmp.lt.s32.totalorder %s248_s3, %s248_s3 }
   0xb   :  { %214 = vmatmul.mubr.msk.f32.gmra.mrb[2].mxu0 %vm23_vm1, %v13_v7  ;;  %229 = vmatmul.mubr.msk.f32.gmra.mrb[2].mxu1 %vm23_vm1, %v18_v8 }
   0xc   :  { %216 = vmatprep.mubr.msk.f32.mxu0 %vm273_vm0, %v274_v4  ;;  %231 = vmatprep.mubr.msk.f32.mxu1 %vm273_vm0, %v274_v4  ;;  %p255_p3 = por %p254_p2, %p253_p1 }
   0xe   :  { %p256_p4 = pnand %p255_p3, %p249_p0 }
   0xf   :  { %217 = vmatmul.mubr.msk.f32.gmra.mrb[4].mxu0 %vm23_vm1, %v14_v9  ;;  %232 = vmatmul.mubr.msk.f32.gmra.mrb[4].mxu1 %vm23_vm1, %v19_v10 }
  0x10   :  { %219 = vmatprep.mubr.msk.f32.mxu0 %vm273_vm0, %v274_v4  ;;  %234 = vmatprep.mubr.msk.f32.mxu1 %vm273_vm0, %v274_v4 }
  0x13   :  { %220 = vmatmul.mubr.msk.f32.gmra.mrb[6].mxu0 %vm23_vm1, %v15_v11  ;;  %235 = vmatmul.mubr.msk.f32.gmra.mrb[6].mxu1 %vm23_vm1, %v20_v12 }
  0x14   :  { %222 = vmatprep.mubr.msk.f32.mxu0 %vm273_vm0, %v274_v4 }
  0x17   :  { %223 = vmatmul.mubr.msk.f32.gmra.mrb[8].mxu0 %vm23_vm1, %v16_v13 }
  0xda   :  { %v117_v14 = vpop.f32.mrb[0].mxu0  ;;  %v142_v15 = vpop.f32.mrb[0].mxu1 }
  0xdb   :  { %161 = vst [vmem:[#allocation2] sm:$0xff] %v117_v14  ;;  %v212_v16 = vpop.f32.mrb[1].mxu0  ;;  %166 = vst [vmem:[#allocation2 + $0x28] sm:$0xff] %v142_v15  ;;  %v227_v17 = vpop.f32.mrb[1].mxu1 }
  0xde   :  { %v122_v18 = vpop.f32.mrb[2].mxu0  ;;  %v147_v19 = vpop.f32.mrb[2].mxu1 }
  0xdf   :  { %162 = vst [vmem:[#allocation2 + $0x8] sm:$0xff] %v122_v18  ;;  %v215_v20 = vpop.f32.mrb[3].mxu0  ;;  %167 = vst [vmem:[#allocation2 + $0x30] sm:$0xff] %v147_v19  ;;  %v230_v21 = vpop.f32.mrb[3].mxu1 }
  0xe2   :  { %v127_v22 = vpop.f32.mrb[4].mxu0  ;;  %v152_v23 = vpop.f32.mrb[4].mxu1 }
  0xe3   :  { %163 = vst [vmem:[#allocation2 + $0x10] sm:$0xff] %v127_v22  ;;  %v218_v24 = vpop.f32.mrb[5].mxu0  ;;  %168 = vst [vmem:[#allocation2 + $0x38] sm:$0xff] %v152_v23  ;;  %v233_v25 = vpop.f32.mrb[5].mxu1 }
  0xe6   :  { %v132_v26 = vpop.f32.mrb[6].mxu0  ;;  %v157_v27 = vpop.f32.mrb[6].mxu1 }
  0xe7   :  { %164 = vst [vmem:[#allocation2 + $0x18] sm:$0xff] %v132_v26  ;;  %v221_v28 = vpop.f32.mrb[7].mxu0  ;;  %169 = vst [vmem:[#allocation2 + $0x40] sm:$0xff] %v157_v27  ;;  %v236_v29 = vpop.f32.mrb[7].mxu1 }
  0xea   :  { %v137_v30 = vpop.f32.mrb[8].mxu0 }
  0xeb   :  { %165 = vst [vmem:[#allocation2 + $0x20] sm:$0xff] %v137_v30  ;;  %v224_v31 = vpop.f32.mrb[9].mxu0 }
  0xec   :  { %259 = shalt.err (!%p256_p4)
}
  0xed   :  { %s260_s6 = scalar_lea.hbm %s358_s2, 1152 }
  0xee   :  { %p261_p5 = scmp.ne.s32.totalorder %s358_s2, %s260_s6  ;;  %p264_p6 = scmp.lt.u32.totalorder %s260_s6, %s358_s2 }
  0xf0   :  { %p266_p7 = pnand %p264_p6, %p261_p5 }
  0xf2   :  { %269 = shalt.err (!%p266_p7)
}
  0xf3   :  { %s276_s11 = smov 128   ;;  %s277_s12 = smov 8  }
  0xf4   :  { %181 = dma.vmem_to_hbm [thread:$0]  %s176_s30, 1152, %s358_s2, [#allocation3], %s276_s11, %s276_s11, %s277_s12  }
  0xf5   :  { %270 = dma.done.wait [#allocation3], 1152  }
  0xf6   :  { %271 = vsyncadd [#allocation3], 4294966144 }
  0xf7   :  { %185 = vsyncpa [#allocation3], 1 }

</bundles_post_ra>
